<compile_context>
chip_gen: v6e
topology: v6e:2x2x1
jax: 0.10.0
libtpu: 0.0.40
codegen_flags: <defaults>
</compile_context>

<pallas_src>
import functools

import jax
import jax.numpy as jnp
from jax.experimental import pallas as pl
from jax.experimental.pallas import tpu as pltpu

_LANE = 128     # vreg lane width
_SUBLANE = 8    # vreg sublane count (f32)


def _round_up(n, m):
    return ((n + m - 1) // m) * m


def _pad_axis(a, axis, target):
    pad = target - a.shape[axis]
    if pad == 0:
        return a
    widths = [(0, 0)] * a.ndim
    widths[axis] = (0, pad)
    return jnp.pad(a, widths)


def autoencoder_kernel(x_ref, we_ref, be_ref, wd_ref, bd_ref, o_ref):
    """y = (x @ We + be) @ Wd + bd.

    we_ref: (Cin_p, Cout_p)  -- encoder weight, pre-transposed at prep time
    wd_ref: (Cout_p, Cin_p)  -- decoder weight, pre-transposed at prep time
    Both matmuls contract over the last dim of the activations: no in-kernel
    transpose, straight into the MXU with f32 accumulation.  Biases are f32 so
    the intermediate stays f32 between the two matmuls.
    """
    h = jnp.dot(x_ref[...], we_ref[...], preferred_element_type=jnp.float32)
    h = h + be_ref[...]
    y = jnp.dot(h.astype(wd_ref.dtype), wd_ref[...],
                preferred_element_type=jnp.float32)
    y = y + bd_ref[...]
    o_ref[...] = y.astype(o_ref.dtype)


def prepare_autoencoder_params(w_enc, b_enc, w_dec, b_dec,
                               compute_dtype=jnp.bfloat16):
    """One-time layout prep — call at model load, NOT per forward call.

    PyTorch Linear layout in: w_enc (Cout, Cin), w_dec (Cin, Cout).
    Returns (we_t, be, wd_t, bd): transposed, zero-padded to lane-dense
    multiples of 128, weights cast to `compute_dtype` (bf16 recommended),
    biases kept f32 for accurate accumulation.
    """
    Cout, Cin = w_enc.shape
    cin_p = _round_up(Cin, _LANE)
    cout_p = _round_up(Cout, _LANE)
    we_t = _pad_axis(_pad_axis(w_enc.T, 0, cin_p), 1, cout_p).astype(compute_dtype)
    wd_t = _pad_axis(_pad_axis(w_dec.T, 0, cout_p), 1, cin_p).astype(compute_dtype)
    be = _pad_axis(b_enc.reshape(1, Cout).astype(jnp.float32), 1, cout_p)
    bd = _pad_axis(b_dec.reshape(1, Cin).astype(jnp.float32), 1, cin_p)
    return we_t, be, wd_t, bd


def _choose_batch_tile(B, block_batch, min_grid_steps):
    """Balanced, sublane-aligned batch tile.

    - >= min_grid_steps grid steps when the batch is large enough (v7x has 2
      TensorCores; each also needs >=2 steps to overlap DMA with compute).
    - Tiles balanced across steps so batch padding is <_SUBLANE rows total
      (instead of up to tb-1 rows with a fixed tile).
    """
    max_steps_no_pad = pl.cdiv(B, _SUBLANE)
    n_steps = max(pl.cdiv(B, block_batch), min(min_grid_steps, max_steps_no_pad))
    tb = _round_up(pl.cdiv(B, n_steps), _SUBLANE)
    grid = pl.cdiv(B, tb)
    return tb, grid


@functools.partial(jax.jit,
                   static_argnames=("block_batch", "min_grid_steps", "out_dtype"))
def autoencoder_forward(x, we_t, be, wd_t, bd, *,
                        block_batch=1024, min_grid_steps=4, out_dtype=None):
    """x: (B, Cin).  we_t/be/wd_t/bd come from prepare_autoencoder_params()."""
    B, Cin = x.shape
    cin_p, cout_p = we_t.shape
    assert Cin <= cin_p and cin_p % _LANE == 0
    assert wd_t.shape == (cout_p, cin_p)

    compute_dtype = we_t.dtype
    if out_dtype is None:
        out_dtype = compute_dtype        # bf16 in/bf16 out on the fast path

    tb, grid = _choose_batch_tile(B, block_batch, min_grid_steps)
    b_p = tb * grid

    # Only the activation tensor is touched per call: cast to the compute dtype
    # (halves HBM bytes for bf16) and pad to the tile grid.  allow_input_fusion
    # below lets XLA fuse this pad/cast into the pallas_call operand instead of
    # materializing an extra HBM round-trip.
    xp = _pad_axis(_pad_axis(x.astype(compute_dtype), 0, b_p), 1, cin_p)

    cbytes = jnp.dtype(compute_dtype).itemsize
    obytes = jnp.dtype(out_dtype).itemsize

    # VMEM budget guard: x/out tiles are double-buffered, weights stay resident
    # (counted double-buffered to be safe), plus f32 intermediates.  If this
    # ever approaches v7x's 64 MiB (feature dims in the thousands, f32
    # weights), switch the prep step to bf16 weights or add a K-grid with an
    # f32 VMEM accumulator instead of raising the limit further.
    vmem_need = (2 * tb * cin_p * cbytes            # x double-buffer
                 + 2 * tb * cin_p * obytes          # out double-buffer
                 + 2 * 2 * cin_p * cout_p * cbytes  # both weights, 2 bufs each
                 + 4 * (cin_p + cout_p) * 4         # biases (negligible)
                 + tb * (cin_p + cout_p) * 4)       # f32 intermediates h, y
    vmem_limit = None
    if vmem_need > 32 * 1024 * 1024:
        vmem_limit = min(int(vmem_need * 5 // 4), 64 * 1024 * 1024)

    cost = pl.CostEstimate(
        flops=4 * b_p * cin_p * cout_p,                     # two matmuls
        transcendentals=0,
        bytes_accessed=(b_p * cin_p * (cbytes + obytes)     # x in + y out
                        + 2 * cin_p * cout_p * cbytes       # both weights
                        + (cin_p + cout_p) * 4))            # biases

    out_p = pl.pallas_call(
        autoencoder_kernel,
        out_shape=jax.ShapeDtypeStruct((b_p, cin_p), out_dtype),
        grid_spec=pltpu.PrefetchScalarGridSpec(
            num_scalar_prefetch=0,
            grid=(grid,),
            in_specs=[
                # Activations streamed (double-buffered) over the batch grid.
                pl.BlockSpec((tb, cin_p), lambda i: (i, 0)),
                # Weights / biases: same block every step -> stay VMEM-resident
                # (only DMA'd once).
                pl.BlockSpec((cin_p, cout_p), lambda i: (0, 0)),
                pl.BlockSpec((1, cout_p), lambda i: (0, 0)),
                pl.BlockSpec((cout_p, cin_p), lambda i: (0, 0)),
                pl.BlockSpec((1, cin_p), lambda i: (0, 0)),
            ],
            out_specs=pl.BlockSpec((tb, cin_p), lambda i: (i, 0)),
        ),
        compiler_params=pltpu.CompilerParams(
            # Batch steps are independent: megacore-shard on v7x's 2 TCs.
            dimension_semantics=("parallel",),
            # Let XLA fuse the pad/cast of x directly into the kernel operand.
            allow_input_fusion=[True, True, True, True, True],
            vmem_limit_bytes=vmem_limit,
        ),
        cost_estimate=cost,
    )(xp, we_t, be, wd_t, bd)

    # Strip batch + lane padding.
    return out_p[:B, :Cin]


if __name__ == "__main__":
    batch = 8
    in_channels = 64
    out_channels = 32

    key = jax.random.PRNGKey(0)
    kx, k1, k2, k3, k4 = jax.random.split(key, 5)

    x = jax.random.normal(kx, (batch, in_channels), dtype=jnp.float32)

    # Deterministic parameter init (mimics PyTorch Linear's uniform(-1/sqrt(fan_in), ...)).
    bound_e = 1.0 / (in_channels ** 0.5)
    w_enc = jax.random.uniform(k1, (out_channels, in_channels),
                               minval=-bound_e, maxval=bound_e, dtype=jnp.float32)
    b_enc = jax.random.uniform(k2, (out_channels,),
                               minval=-bound_e, maxval=bound_e, dtype=jnp.float32)
    bound_d = 1.0 / (out_channels ** 0.5)
    w_dec = jax.random.uniform(k3, (in_channels, out_channels),
                               minval=-bound_d, maxval=bound_d, dtype=jnp.float32)
    b_dec = jax.random.uniform(k4, (in_channels,),
                               minval=-bound_d, maxval=bound_d, dtype=jnp.float32)

    # Reference in plain JAX (PyTorch Linear semantics: y = x @ W^T + b).
    ref = (x @ w_enc.T + b_enc) @ w_dec.T + b_dec

    # --- f32 path: tight correctness check ------------------------------------
    params_f32 = prepare_autoencoder_params(w_enc, b_enc, w_dec, b_dec,
                                            compute_dtype=jnp.float32)
    out_f32 = jax.block_until_ready(autoencoder_forward(x, *params_f32))
    assert out_f32.shape == (batch, in_channels)
    assert out_f32.dtype == jnp.float32
    assert jnp.allclose(out_f32, ref, atol=1e-5, rtol=1e-5)

    # --- bf16 path (recommended perf path): relaxed tolerance ------------------
    params_bf16 = prepare_autoencoder_params(w_enc, b_enc, w_dec, b_dec)  # bf16
    out_bf16 = jax.block_until_ready(autoencoder_forward(x, *params_bf16))
    assert out_bf16.shape == (batch, in_channels)
    assert out_bf16.dtype == jnp.bfloat16
    assert jnp.allclose(out_bf16.astype(jnp.float32), ref, atol=5e-2, rtol=5e-2)

    print("KERNEL_OK")
</pallas_src>

<mosaic_0001>
module attributes {stable_mosaic.version = 11 : i64} {
  func.func @autoencoder_kernel(%arg0: i32, %arg1: memref<8x128xf32, #tpu.memory_space<vmem>>, %arg2: memref<128x128xf32, #tpu.memory_space<vmem>>, %arg3: memref<1x128xf32, #tpu.memory_space<vmem>>, %arg4: memref<128x128xf32, #tpu.memory_space<vmem>>, %arg5: memref<1x128xf32, #tpu.memory_space<vmem>>, %arg6: memref<8x128xf32, #tpu.memory_space<vmem>>) attributes {dimension_semantics = [#tpu.dimension_semantics<parallel>], iteration_bounds = array<i64: 1>, scalar_prefetch = 0 : i64, scratch_operands = 0 : i64, tpu.core_type = #tpu.core_type<tc>, window_params = [{transform_indices = @transform_0, window_bounds = array<i64: 8, 128>}, {pipeline_mode = #tpu.pipeline_mode<synchronous>, transform_indices = @transform_1, window_bounds = array<i64: 128, 128>}, {pipeline_mode = #tpu.pipeline_mode<synchronous>, transform_indices = @transform_2, window_bounds = array<i64: 1, 128>}, {pipeline_mode = #tpu.pipeline_mode<synchronous>, transform_indices = @transform_3, window_bounds = array<i64: 128, 128>}, {pipeline_mode = #tpu.pipeline_mode<synchronous>, transform_indices = @transform_4, window_bounds = array<i64: 1, 128>}, {transform_indices = @transform_5, window_bounds = array<i64: 8, 128>}]} {
    %c0 = arith.constant 0 : index
    %c0_0 = arith.constant 0 : index
    %0 = vector.load %arg1[%c0, %c0_0] : memref<8x128xf32, #tpu.memory_space<vmem>>, vector<8x128xf32>
    %c0_1 = arith.constant 0 : index
    %c0_2 = arith.constant 0 : index
    %1 = vector.load %arg2[%c0_1, %c0_2] : memref<128x128xf32, #tpu.memory_space<vmem>>, vector<128x128xf32>
    %cst = arith.constant dense<0.000000e+00> : vector<8x128xf32>
    %2 = tpu.matmul %0, %1, %cst {dimension_numbers = #tpu.dot_dimension_numbers<[1], [0], [0], [1], [0, 0, 1, 1], [], []>} : vector<8x128xf32>, vector<128x128xf32>, vector<8x128xf32> -> vector<8x128xf32>
    %c0_3 = arith.constant 0 : index
    %c0_4 = arith.constant 0 : index
    %3 = vector.load %arg3[%c0_3, %c0_4] : memref<1x128xf32, #tpu.memory_space<vmem>>, vector<1x128xf32>
    %4 = vector.broadcast %3 : vector<1x128xf32> to vector<8x128xf32>
    %5 = arith.addf %2, %4 : vector<8x128xf32>
    %c0_5 = arith.constant 0 : index
    %c0_6 = arith.constant 0 : index
    %6 = vector.load %arg4[%c0_5, %c0_6] : memref<128x128xf32, #tpu.memory_space<vmem>>, vector<128x128xf32>
    %cst_7 = arith.constant dense<0.000000e+00> : vector<8x128xf32>
    %7 = tpu.matmul %5, %6, %cst_7 {dimension_numbers = #tpu.dot_dimension_numbers<[1], [0], [0], [1], [0, 0, 1, 1], [], []>} : vector<8x128xf32>, vector<128x128xf32>, vector<8x128xf32> -> vector<8x128xf32>
    %c0_8 = arith.constant 0 : index
    %c0_9 = arith.constant 0 : index
    %8 = vector.load %arg5[%c0_8, %c0_9] : memref<1x128xf32, #tpu.memory_space<vmem>>, vector<1x128xf32>
    %9 = vector.broadcast %8 : vector<1x128xf32> to vector<8x128xf32>
    %10 = arith.addf %7, %9 : vector<8x128xf32>
    %c0_10 = arith.constant 0 : index
    %c0_11 = arith.constant 0 : index
    %11 = vector.load %arg6[%c0_10, %c0_11] : memref<8x128xf32, #tpu.memory_space<vmem>>, vector<8x128xf32>
    tpu.vector_store %arg6[%c0_10, %c0_11], %10 {strides = array<i32>} : memref<8x128xf32, #tpu.memory_space<vmem>>, vector<8x128xf32>,
    return
  }
  func.func @transform_0(%arg0: i32) -> (i32, i32) {
    %c0_i32 = arith.constant 0 : i32
    %c0_i32_0 = arith.constant 0 : i32
    return %arg0, %c0_i32 : i32, i32
  }
  func.func @transform_1(%arg0: i32) -> (i32, i32) {
    %c0_i32 = arith.constant 0 : i32
    %c0_i32_0 = arith.constant 0 : i32
    %c0_i32_1 = arith.constant 0 : i32
    return %c0_i32, %c0_i32_0 : i32, i32
  }
  func.func @transform_2(%arg0: i32) -> (i32, i32) {
    %c0_i32 = arith.constant 0 : i32
    %c0_i32_0 = arith.constant 0 : i32
    %c0_i32_1 = arith.constant 0 : i32
    return %c0_i32, %c0_i32_0 : i32, i32
  }
  func.func @transform_3(%arg0: i32) -> (i32, i32) {
    %c0_i32 = arith.constant 0 : i32
    %c0_i32_0 = arith.constant 0 : i32
    %c0_i32_1 = arith.constant 0 : i32
    return %c0_i32, %c0_i32_0 : i32, i32
  }
  func.func @transform_4(%arg0: i32) -> (i32, i32) {
    %c0_i32 = arith.constant 0 : i32
    %c0_i32_0 = arith.constant 0 : i32
    %c0_i32_1 = arith.constant 0 : i32
    return %c0_i32, %c0_i32_0 : i32, i32
  }
  func.func @transform_5(%arg0: i32) -> (i32, i32) {
    %c0_i32 = arith.constant 0 : i32
    %c0_i32_0 = arith.constant 0 : i32
    return %arg0, %c0_i32 : i32, i32
  }
}

</mosaic_0001>

<bundles_post_ra>
// kernel: autoencoder_forward.2
= control target key start
LH: loop header
LB: loop body
LE: loop exit
PB: predicated region body
PF: predicated region fallthrough
CT: control target
= control target key end

     0   :  { %s577_s0 = inlined_call_operand.hbm [shape: f32[128,128], index: 0, kind: input, shape index: {}]   ;;  %s578_s1 = inlined_call_operand.vmem [shape: f32[1,128], index: 1, kind: input, shape index: {}]   ;;  %s579_s2 = inlined_call_operand.hbm [shape: f32[128,128], index: 2, kind: input, shape index: {}]   ;;  %s580_s3 = inlined_call_operand.vmem [shape: f32[1,128], index: 3, kind: input, shape index: {}]   ;;  %s581_s4 = inlined_call_operand.hbm [shape: f32[8,64], index: 4, kind: input, shape index: {}]   ;;  %s582_s5 = inlined_call_operand.<no memory space> [shape: f32[], index: 5, kind: input, shape index: {}]   ;;  %s583_s6 = inlined_call_operand.hbm [shape: f32[8,128], index: 6, kind: output, shape index: {}]  }
   0x1   :  { %v11_v0 = vstv %s582_s5 }
   0x2   :  { %12 = vsyncpa [#allocation8], 0 }
   0x3   :  { %13 = vsyncpa [#allocation11], 0 }
   0x4   :  { %14 = vsyncpa [#allocation9], 0  ;;  %s475_s23 = smov [#allocation10]  }
   0x5   :  { %s30_s24 = sshll.u32 %s475_s23, 4  ;;  %s31_s24 = int_to_ptr.vmem [resolvable:$true] %s30_s24 }
   0x6   :  { %s397_s25 = scalar_lea.vmem %s31_s24, 2048  ;;  %p402_p1 = scmp.lt.s32.totalorder %s31_s24, %s31_s24 }
   0x7   :  { %p398_p0 = scmp.ne.s32.totalorder %s31_s24, %s397_s25  ;;  %p403_p2 = scmp.lt.s32.totalorder %s397_s25, %s397_s25 }
   0x9   :  { %p404_p3 = por %p403_p2, %p402_p1 }
   0xb   :  { %p405_p4 = pnand %p404_p3, %p398_p0 }
   0xd   :  { %408 = shalt.err (!%p405_p4)
}
   0xe   :  { %s476_s26 = smov 128   ;;  %s477_s27 = smov 8  }
   0xf   :  { %36 = dma.hbm_to_vmem [thread:$0]  %s577_s0, 2048, %s31_s24, [#allocation11], %s476_s26, %s476_s26, %s477_s27  }
  0x10   :  { %s478_s30 = smov [#allocation7]   ;;  %s479_s8 = smov [#allocation12]  }
  0x11   :  { %s21_s7 = sshll.u32 %s478_s30, 4  ;;  %s44_s9 = sshll.u32 %s479_s8, 4  ;;  %s22_s7 = int_to_ptr.vmem [resolvable:$true] %s21_s7  ;;  %s45_s9 = int_to_ptr.vmem [resolvable:$true] %s44_s9 }
  0x12   :  { %s417_s10 = scalar_lea.vmem %s22_s7, 128  ;;  %p422_p6 = scmp.lt.s32.totalorder %s22_s7, %s22_s7 }
  0x13   :  { %p418_p5 = scmp.ne.s32.totalorder %s22_s7, %s417_s10  ;;  %p423_p7 = scmp.lt.s32.totalorder %s417_s10, %s417_s10 }
  0x15   :  { %p424_p8 = por %p423_p7, %p422_p6 }
  0x17   :  { %p425_p9 = pnand %p424_p8, %p418_p5 }
  0x19   :  { %428 = shalt.err (!%p425_p9)
}
  0x1a   :  { %24 = dma.hbm_to_vmem [thread:$0]  %s581_s4, 128, %s22_s7, [#allocation8]  }
  0x1b   :  { %s437_s13 = scalar_lea.vmem %s45_s9, 2048  ;;  %p442_p11 = scmp.lt.s32.totalorder %s45_s9, %s45_s9 }
  0x1c   :  { %p438_p10 = scmp.ne.s32.totalorder %s45_s9, %s437_s13  ;;  %p443_p12 = scmp.lt.s32.totalorder %s437_s13, %s437_s13 }
  0x1e   :  { %p444_p13 = por %p443_p12, %p442_p11 }
  0x20   :  { %p445_p0 = pnand %p444_p13, %p438_p10 }
  0x22   :  { %448 = shalt.err (!%p445_p0)
}
  0x23   :  { %50 = dma.hbm_to_vmem [thread:$0]  %s579_s2, 2048, %s45_s9, [#allocation11], %s476_s26, %s476_s26, %s477_s27  }
  0x24   :  { %469 = dma.done.wait [#allocation8], 128  }
  0x25   :  { %470 = vsyncadd [#allocation8], 4294967168 }
  0x26   :  { %471 = dma.done.wait [#allocation11], 4096  }
  0x27   :  { %472 = vsyncadd [#allocation11], 4294963200  ;;  %v480_v1 = vmov 0.0   ;;  %vm481_vm0 = vmmov 0   ;;  %v87_v2 = vld [vmem:[#allocation10 + $0x78] sm:$0xff]  ;;  %v86_v3 = vld [vmem:[#allocation10 + $0x70] sm:$0xff]  ;;  %v63_v21 = vlaneseq }
  0x28   :  { %311 = vmatprep.subr.mxu0 %v480_v1  ;;  %343 = vmatprep.mubr.msk.f32.mxu0 %vm481_vm0, %v480_v1  ;;  %v85_v4 = vld [vmem:[#allocation10 + $0x68] sm:$0xff]  ;;  %v84_v5 = vld [vmem:[#allocation10 + $0x60] sm:$0xff]  ;;  %v180_v6 = vld [vmem:[#allocation12 + $0x78] sm:$0xff]  ;;  %s482_s18 = smov [#allocation13]  }
  0x29   :  { %346 = vmatprep.subr.mxu1 %v480_v1  ;;  %378 = vmatprep.mubr.msk.f32.mxu1 %vm481_vm0, %v480_v1  ;;  %v83_v7 = vld [vmem:[#allocation10 + $0x58] sm:$0xff]  ;;  %v179_v8 = vld [vmem:[#allocation12 + $0x70] sm:$0xff]  ;;  %v178_v9 = vld [vmem:[#allocation12 + $0x68] sm:$0xff]  ;;  %v64_v26 = vand.u32 127, %v63_v21  ;;  %s265_s19 = sshll.u32 %s482_s18, 4  ;;  %s266_s19 = int_to_ptr.vmem [resolvable:$true] %s265_s19 }
  0x2a   :  { %312 = vmatpush3.msra.mxu0 %v87_v2  ;;  %347 = vmatpush3.msra.mxu1 %v180_v6  ;;  %v82_v10 = vld [vmem:[#allocation10 + $0x50] sm:$0xff]  ;;  %v177_v11 = vld [vmem:[#allocation12 + $0x60] sm:$0xff]  ;;  %v81_v12 = vld [vmem:[#allocation10 + $0x48] sm:$0xff]  ;;  %s449_s20 = scalar_lea.vmem %s266_s19, 128  ;;  %p454_p2 = scmp.lt.s32.totalorder %s266_s19, %s266_s19 }
  0x2b   :  { %313 = vmatprep.subr.mxu0 %v480_v1  ;;  %348 = vmatprep.subr.mxu1 %v480_v1  ;;  %v176_v13 = vld [vmem:[#allocation12 + $0x58] sm:$0xff]  ;;  %v80_v14 = vld [vmem:[#allocation10 + $0x40] sm:$0xff]  ;;  %v175_v15 = vld [vmem:[#allocation12 + $0x50] sm:$0xff]  ;;  %vm66_vm1 = vcmp.lt.s32.totalorder %v64_v26, 64  ;;  %p450_p1 = scmp.ne.s32.totalorder %s266_s19, %s449_s20  ;;  %p455_p3 = scmp.lt.s32.totalorder %s449_s20, %s449_s20 }
  0x2c   :  { %314 = vmatpush3.msra.mxu0 %v86_v3  ;;  %349 = vmatpush3.msra.mxu1 %v179_v8  ;;  %v79_v16 = vld [vmem:[#allocation10 + $0x38] sm:$0xff]  ;;  %v174_v17 = vld [vmem:[#allocation12 + $0x48] sm:$0xff]  ;;  %v78_v18 = vld [vmem:[#allocation10 + $0x30] sm:$0xff] }
  0x2d   :  { %315 = vmatprep.subr.mxu0 %v480_v1  ;;  %350 = vmatprep.subr.mxu1 %v480_v1  ;;  %v173_v19 = vld [vmem:[#allocation12 + $0x40] sm:$0xff]  ;;  %v77_v20 = vld [vmem:[#allocation10 + $0x28] sm:$0xff]  ;;  %v172_v22 = vld [vmem:[#allocation12 + $0x38] sm:$0xff]  ;;  %p456_p4 = por %p455_p3, %p454_p2 }
  0x2e   :  { %316 = vmatpush3.msra.mxu0 %v85_v4  ;;  %351 = vmatpush3.msra.mxu1 %v178_v9  ;;  %v76_v23 = vld [vmem:[#allocation10 + $0x20] sm:$0xff]  ;;  %v171_v24 = vld [vmem:[#allocation12 + $0x30] sm:$0xff]  ;;  %v75_v25 = vld [vmem:[#allocation10 + $0x18] sm:$0xff] }
  0x2f   :  { %317 = vmatprep.subr.mxu0 %v480_v1  ;;  %352 = vmatprep.subr.mxu1 %v480_v1  ;;  %v170_v27 = vld [vmem:[#allocation12 + $0x28] sm:$0xff]  ;;  %v74_v28 = vld [vmem:[#allocation10 + $0x10] sm:$0xff]  ;;  %v169_v29 = vld [vmem:[#allocation12 + $0x20] sm:$0xff]  ;;  %p457_p5 = pnand %p456_p4, %p450_p1 }
  0x30   :  { %318 = vmatpush3.msra.mxu0 %v84_v5  ;;  %353 = vmatpush3.msra.mxu1 %v177_v11  ;;  %v73_v30 = vld [vmem:[#allocation10 + $0x8] sm:$0xff]  ;;  %v62_v31 = vld [vmem:[#allocation7] sm:$0xff]  ;;  %v72_v33 = vld [vmem:[#allocation10] sm:$0xff] }
  0x31   :  { %319 = vmatprep.subr.mxu0 %v480_v1  ;;  %354 = vmatprep.subr.mxu1 %v480_v1  ;;  %v168_v32 = vld [vmem:[#allocation12 + $0x18] sm:$0xff]  ;;  %v67_v34 = vsel %vm66_vm1, %v62_v31, %v11_v0  ;;  %v167_v35 = vld [vmem:[#allocation12 + $0x10] sm:$0xff]  ;;  %v166_v36 = vld [vmem:[#allocation12 + $0x8] sm:$0xff] }
  0x32   :  { %320 = vmatpush3.msra.mxu0 %v83_v7  ;;  %355 = vmatpush3.msra.mxu1 %v176_v13  ;;  %v165_v37 = vld [vmem:[#allocation12] sm:$0xff]  ;;  %v275_v38 = vld [vmem:[%s578_s1] ss:$0 sm:$0xff] }
  0x33   :  { %321 = vmatprep.subr.mxu0 %v480_v1  ;;  %356 = vmatprep.subr.mxu1 %v480_v1  ;;  %v276_v42 = vld [vmem:[%s580_s3] ss:$0 sm:$0xff] }
  0x34   :  { %322 = vmatpush3.msra.mxu0 %v82_v10  ;;  %357 = vmatpush3.msra.mxu1 %v175_v15 }
  0x35   :  { %323 = vmatprep.subr.mxu0 %v480_v1  ;;  %358 = vmatprep.subr.mxu1 %v480_v1 }
  0x36   :  { %324 = vmatpush3.msra.mxu0 %v81_v12  ;;  %359 = vmatpush3.msra.mxu1 %v174_v17 }
  0x37   :  { %325 = vmatprep.subr.mxu0 %v480_v1  ;;  %360 = vmatprep.subr.mxu1 %v480_v1 }
  0x38   :  { %326 = vmatpush3.msra.mxu0 %v80_v14  ;;  %361 = vmatpush3.msra.mxu1 %v173_v19 }
  0x39   :  { %327 = vmatprep.subr.mxu0 %v480_v1  ;;  %362 = vmatprep.subr.mxu1 %v480_v1 }
  0x3a   :  { %328 = vmatpush3.msra.mxu0 %v79_v16  ;;  %363 = vmatpush3.msra.mxu1 %v172_v22 }
  0x3b   :  { %329 = vmatprep.subr.mxu0 %v480_v1  ;;  %364 = vmatprep.subr.mxu1 %v480_v1 }
  0x3c   :  { %330 = vmatpush3.msra.mxu0 %v78_v18  ;;  %365 = vmatpush3.msra.mxu1 %v171_v24 }
  0x3d   :  { %331 = vmatprep.subr.mxu0 %v480_v1  ;;  %366 = vmatprep.subr.mxu1 %v480_v1 }
  0x3e   :  { %332 = vmatpush3.msra.mxu0 %v77_v20  ;;  %367 = vmatpush3.msra.mxu1 %v170_v27 }
  0x3f   :  { %333 = vmatprep.subr.mxu0 %v480_v1  ;;  %368 = vmatprep.subr.mxu1 %v480_v1 }
  0x40   :  { %334 = vmatpush3.msra.mxu0 %v76_v23  ;;  %369 = vmatpush3.msra.mxu1 %v169_v29 }
  0x41   :  { %335 = vmatprep.subr.mxu0 %v480_v1  ;;  %370 = vmatprep.subr.mxu1 %v480_v1 }
  0x42   :  { %336 = vmatpush3.msra.mxu0 %v75_v25  ;;  %371 = vmatpush3.msra.mxu1 %v168_v32 }
  0x43   :  { %337 = vmatprep.subr.mxu0 %v480_v1  ;;  %372 = vmatprep.subr.mxu1 %v480_v1 }
  0x44   :  { %338 = vmatpush3.msra.mxu0 %v74_v28  ;;  %373 = vmatpush3.msra.mxu1 %v167_v35 }
  0x45   :  { %339 = vmatprep.subr.mxu0 %v480_v1  ;;  %374 = vmatprep.subr.mxu1 %v480_v1 }
  0x46   :  { %340 = vmatpush3.msra.mxu0 %v73_v30  ;;  %375 = vmatpush3.msra.mxu1 %v166_v36 }
  0x47   :  { %341 = vmatprep.subr.mxu0 %v480_v1  ;;  %376 = vmatprep.subr.mxu1 %v480_v1 }
  0x48   :  { %342 = vmatpush3.msra.mxu0 %v72_v33  ;;  %377 = vmatpush3.msra.mxu1 %v165_v37 }
  0x49   :  { %344 = vmatmul.mubr.f32.vlgmr.msra.gmra.mxu0 %v67_v34 }
 0x109   :  { %v161_v39 = vpop.f32.mrf.mxu0 }
 0x10a   :  { %v162_v40 = vadd.f32 %v275_v38, %v161_v39 }
 0x10b   :  { %v345_v41 = vpop.f32.mrf.mxu0 }
 0x10c   :  { %379 = vmatmul.mubr.f32.vlgmr.msra.gmra.mxu1 %v162_v40 }
 0x1cc   :  { %v254_v43 = vpop.f32.mrf.mxu1 }
 0x1cd   :  { %v255_v44 = vadd.f32 %v276_v42, %v254_v43 }
 0x1ce   :  { %v380_v45 = vpop.f32.mrf.mxu1 }
 0x1cf   :  { %258 = vst [vmem:[#allocation13] sm:$0xff] %v255_v44 }
 0x1d0   :  { %460 = shalt.err (!%p457_p5)
}
 0x1d1   :  { %268 = dma.vmem_to_hbm [thread:$0]  %s266_s19, 128, %s583_s6, [#allocation9]  }
 0x1d2   :  { %473 = dma.done.wait [#allocation9], 128  }
 0x1d3   :  { %474 = vsyncadd [#allocation9], 4294967168 }
 0x1d4   :  { %272 = vsyncpa [#allocation8], 1 }
 0x1d5   :  { %273 = vsyncpa [#allocation11], 1 }
 0x1d6   :  { %274 = vsyncpa [#allocation9], 1 }

</bundles_post_ra>
